<compile_context>
chip_gen: v5e
topology: v5e:2x2
jax: 0.10.0
libtpu: 0.0.40
codegen_flags: <defaults>
</compile_context>

<pallas_src>
import jax
import jax.numpy as jnp
from jax.experimental import pallas as pl
from jax.experimental.pallas import tpu as pltpu


def _round_up(x, m):
    return ((x + m - 1) // m) * m


_COMPILER_PARAMS = pltpu.CompilerParams(
    dimension_semantics=("parallel",),
    vmem_limit_bytes=32 * 1024 * 1024,
)

_MAX_SINGLE_TILE = 2048   # layers with M <= this run as one lane-dense tile (IN fusible)
_BIG_TILE = 2048          # M tile for the large early/late layers


def _tile_plan(m_grid):
    if m_grid <= _MAX_SINGLE_TILE:
        tm = _round_up(m_grid, 128)
    else:
        tm = _BIG_TILE
    mp = _round_up(m_grid, tm)
    return tm, mp, mp // tm


# ---------------------------------------------------------------------------
# Pallas kernel: fused 2x2 stride-1 conv  (4 shifted matmuls, f32 accumulate)
# + bias + optional InstanceNorm (masked, f32 stats) + activation.
# ---------------------------------------------------------------------------
def _conv2x2(parts, weights, *, wrow, bias=None, act="none", norm=None,
             mask=None, count=None, out_dtype=jnp.bfloat16, eps=1e-5):
    """parts   : list of (K_p, M_grid) flattened activations (flat over (N, Hg, Wg)).
       weights : list of (4, R, K_p); leading axis = tap shift (m, n) row-major,
                 matching flat tap offsets (0, 1, wrow, wrow + 1).
       Returns (R, Mp)."""
    m_grid = parts[0].shape[1]
    tm, mp, n_tiles = _tile_plan(m_grid)
    halo = _round_up(wrow + 2, 128)
    if norm is not None:
        assert n_tiles == 1, "fused InstanceNorm needs the whole layer in one M tile"

    xs, ws = [], []
    for p_, w_ in zip(parts, weights):
        kp = p_.shape[0]
        kpp = _round_up(kp, 8)
        x_ = jnp.pad(p_, ((0, kpp - kp), (0, mp + halo - m_grid))).astype(jnp.bfloat16)
        if kpp != kp:
            w_ = jnp.pad(w_, ((0, 0), (0, 0), (0, kpp - kp)))
        xs.append(x_)
        ws.append(w_.astype(jnp.bfloat16))

    n_parts = len(xs)
    has_bias = bias is not None
    has_mask = norm is not None
    R = ws[0].shape[1]
    offsets = (0, 1, wrow, wrow + 1)

    def kernel(*refs):
        x_refs = refs[:n_parts]
        w_refs = refs[n_parts:2 * n_parts]
        idx = 2 * n_parts
        b_ref = None
        m_ref = None
        if has_bias:
            b_ref = refs[idx]
            idx += 1
        if has_mask:
            m_ref = refs[idx]
            idx += 1
        o_ref = refs[idx]

        i = pl.program_id(0)
        start = pl.multiple_of(i * tm, tm)
        acc = jnp.zeros((R, tm), jnp.float32)
        for p in range(n_parts):
            win = x_refs[p][:, pl.ds(start, tm + halo)]
            for s in range(4):
                acc = acc + jnp.dot(w_refs[p][s],
                                    win[:, offsets[s]:offsets[s] + tm],
                                    preferred_element_type=jnp.float32)
        if has_bias:
            acc = acc + b_ref[...]
        if norm == "chan":
            # per-row (== per channel, N == 1) stats over valid columns, f32
            mk = m_ref[...]
            inv = 1.0 / count
            mean = jnp.sum(acc * mk, axis=-1, keepdims=True) * inv
            cen = (acc - mean) * mk
            var = jnp.sum(cen * cen, axis=-1, keepdims=True) * inv
            acc = (acc - mean) * jax.lax.rsqrt(var + eps)
        elif norm == "parity":
            # rows are (r, s, o); pool stats over the 4 parities with per-parity masks
            mk = m_ref[...][:, None, :]
            co = R // 4            # multiple of 8 for all fused layers
            y4 = acc.reshape(4, co, tm)
            inv = 1.0 / count
            mean = jnp.sum(y4 * mk, axis=(0, 2), keepdims=True) * inv
            cen = (y4 - mean) * mk
            var = jnp.sum(cen * cen, axis=(0, 2), keepdims=True) * inv
            acc = ((y4 - mean) * jax.lax.rsqrt(var + eps)).reshape(R, tm)
        if act == "leaky":
            acc = jnp.where(acc > 0, acc, 0.2 * acc)
        elif act == "relu":
            acc = jnp.maximum(acc, 0.0)
        elif act == "tanh":
            acc = jnp.tanh(acc)
        o_ref[...] = acc.astype(o_ref.dtype)

    in_specs, args = [], []
    for p in range(n_parts):
        in_specs.append(pl.BlockSpec(xs[p].shape, lambda i: (0, 0)))   # VMEM resident
        args.append(xs[p])
    for p in range(n_parts):
        in_specs.append(pl.BlockSpec(ws[p].shape, lambda i: (0, 0, 0)))
        args.append(ws[p])
    if has_bias:
        in_specs.append(pl.BlockSpec((R, 1), lambda i: (0, 0)))
        args.append(jnp.asarray(bias, jnp.float32).reshape(R, 1))
    if has_mask:
        mfull = jnp.pad(mask, ((0, 0), (0, mp - mask.shape[1]))).astype(jnp.float32)
        in_specs.append(pl.BlockSpec(mfull.shape, lambda i: (0, 0)))
        args.append(mfull)

    return pl.pallas_call(
        kernel,
        out_shape=jax.ShapeDtypeStruct((R, mp), out_dtype),
        grid=(n_tiles,),
        in_specs=in_specs,
        out_specs=pl.BlockSpec((R, tm), lambda i: (0, i)),
        compiler_params=_COMPILER_PARAMS,
    )(*args)


# ---------------------------------------------------------------------------
# Pallas kernel: InstanceNorm2d (eps=1e-5, affine=False) + activation
# (only used for the few layers whose M does not fit a single tile)
# ---------------------------------------------------------------------------
def _instance_norm_act(x2d, act, eps=1e-5):
    R, S = x2d.shape
    tr = R
    for cand in (32, 16, 8):
        if R % cand == 0:
            tr = cand
            break

    def kernel(x_ref, o_ref):
        v = x_ref[...].astype(jnp.float32)
        mu = jnp.mean(v, axis=-1, keepdims=True)
        c = v - mu
        var = jnp.mean(c * c, axis=-1, keepdims=True)
        y = c * jax.lax.rsqrt(var + eps)
        if act == "leaky":
            y = jnp.where(y > 0, y, 0.2 * y)
        else:
            y = jnp.maximum(y, 0.0)
        o_ref[...] = y.astype(o_ref.dtype)

    return pl.pallas_call(
        kernel,
        out_shape=jax.ShapeDtypeStruct((R, S), x2d.dtype),
        grid=(R // tr,),
        in_specs=[pl.BlockSpec((tr, S), lambda i: (i, 0))],
        out_specs=pl.BlockSpec((tr, S), lambda i: (i, 0)),
        compiler_params=_COMPILER_PARAMS,
    )(x2d)


# ---------------------------------------------------------------------------
# Weight re-layouts (hoisted into prepare_params, done once)
# ---------------------------------------------------------------------------
def _down_wprep(w):
    """torch Conv2d weight (Cout, Cin, 4, 4) -> (4 shifts, Cout, 4*Cin).
       shift = (m, n) row-major; columns ordered (pr, pc, cin) to match parity planes."""
    cout, cin = w.shape[0], w.shape[1]
    w6 = w.reshape(cout, cin, 2, 2, 2, 2)            # (o, c, m, pr, n, pc)
    w6 = jnp.transpose(w6, (2, 4, 0, 3, 5, 1))       # (m, n, o, pr, pc, c)
    return w6.reshape(4, cout, 4 * cin)


_UIDX = ((3, 1), (2, 0))


def _up_wprep(wt):
    """torch ConvTranspose2d weight (Cin, Cout, 4, 4) -> (4 shifts, 4*Cout, Cin).
       Rows ordered (r, s, o) (sub-pixel parities); shift = (m, n) row-major."""
    cin, cout = wt.shape[0], wt.shape[1]
    uidx = jnp.array(_UIDX, dtype=jnp.int32)
    wp = jnp.transpose(wt, (2, 3, 1, 0))             # (u, v, o, c)
    b = wp[uidx]                                     # (r, m, v, o, c)
    b = b[:, :, uidx]                                # (r, m, s, n, o, c)
    b = jnp.transpose(b, (1, 3, 0, 2, 4, 5))         # (m, n, r, s, o, c)
    return b.reshape(4, 4 * cout, cin)


# ---------------------------------------------------------------------------
# Down block: Conv2d(k=4,s=2,p=1) -> [InstanceNorm] -> LeakyReLU(0.2)
# ---------------------------------------------------------------------------
def down_block(a, w_shift, bias=None, normalize=True):
    C, N, H, W = a.shape
    cout = w_shift.shape[1]
    ho, wo = H // 2, W // 2
    hh, wh = ho + 1, wo + 1
    # space-to-depth parity split of the 1-padded input: 4 contiguous planes
    ap = jnp.pad(a, ((0, 0), (0, 0), (1, 1), (1, 1)))
    planes = jnp.stack([ap[:, :, pr::2, pc::2] for pr in range(2) for pc in range(2)], 0)
    xflat = planes.reshape(4 * C, N * hh * wh).astype(jnp.bfloat16)
    m_grid = N * hh * wh
    _, _, n_tiles = _tile_plan(m_grid)
    fuse_in = normalize and n_tiles == 1 and N == 1

    if not normalize:
        out = _conv2x2([xflat], [w_shift], wrow=wh, bias=bias, act="leaky")
    elif fuse_in:
        # conv bias is dropped: cancelled by InstanceNorm (affine=False)
        vm = (jnp.arange(hh) < ho)[:, None] & (jnp.arange(wh) < wo)[None, :]
        vmask = jnp.broadcast_to(vm, (N, hh, wh)).reshape(1, m_grid)
        out = _conv2x2([xflat], [w_shift], wrow=wh, act="leaky",
                       norm="chan", mask=vmask, count=float(N * ho * wo))
    else:
        out = _conv2x2([xflat], [w_shift], wrow=wh, act="none")

    y = out[:, :m_grid].reshape(cout, N, hh, wh)[:, :, :ho, :wo]
    if normalize and not fuse_in:
        y = _instance_norm_act(y.reshape(cout * N, ho * wo), act="leaky")
        y = y.reshape(cout, N, ho, wo)
    return y


# ---------------------------------------------------------------------------
# Up block: ConvTranspose2d(k=4,s=2,p=1) -> InstanceNorm -> ReLU  (or Tanh if final)
# ---------------------------------------------------------------------------
def up_block(parts, w_shifts, bias=None, final=False):
    _, N, H, W = parts[0].shape
    cout = w_shifts[0].shape[1] // 4
    hg, wg = H + 2, W + 2
    m_grid = N * hg * wg
    _, _, n_tiles = _tile_plan(m_grid)
    fuse_in = (not final) and n_tiles == 1 and N == 1

    # skip-connection concat folded into separate parts (no HBM concat)
    flats = [jnp.pad(p, ((0, 0), (0, 0), (1, 1), (1, 1)))
             .reshape(p.shape[0], m_grid).astype(jnp.bfloat16) for p in parts]

    if final:
        out = _conv2x2(flats, w_shifts, wrow=wg, bias=bias, act="tanh",
                       out_dtype=jnp.float32)
    elif fuse_in:
        ri = jnp.arange(hg)[:, None]
        ci = jnp.arange(wg)[None, :]
        msks = [((ri >= r) & (ri < r + H) & (ci >= s) & (ci < s + W))
                for r in range(2) for s in range(2)]
        pmask = jnp.stack([jnp.broadcast_to(m, (N, hg, wg)).reshape(m_grid)
                           for m in msks], 0)
        out = _conv2x2(flats, w_shifts, wrow=wg, act="relu",
                       norm="parity", mask=pmask, count=float(4 * N * H * W))
    else:
        out = _conv2x2(flats, w_shifts, wrow=wg, act="none")

    # sub-pixel interleave: (r, s, o)(a, b) -> (o)(2a - r, 2b - s)
    # TODO(synk): remaining XLA layout glue on the up path.
    z = out[:, :m_grid].reshape(2, 2, cout, N, hg, wg)
    y = jnp.stack([jnp.stack([z[r, s, :, :, r:r + H, s:s + W] for s in range(2)], 0)
                   for r in range(2)], 0)                       # (r, s, Cout, N, H, W)
    y = jnp.transpose(y, (2, 3, 4, 0, 5, 1)).reshape(cout, N, 2 * H, 2 * W)
    if final or fuse_in:
        return y
    # TODO(synk): Dropout(0.5) on up1-up3 treated as identity (eval-mode semantics).
    y = _instance_norm_act(y.reshape(cout * N, 4 * H * W), act="relu")
    return y.reshape(cout, N, 2 * H, 2 * W)


# ---------------------------------------------------------------------------
# Parameters (deterministic synthetic init, PyTorch weight layouts) + prep
# ---------------------------------------------------------------------------
def init_params(key, in_ch=3, out_ch=3, bf=4):
    keys = iter(jax.random.split(key, 32))

    def conv_w(cout, cin):   # nn.Conv2d weight
        return 0.05 * jax.random.normal(next(keys), (cout, cin, 4, 4), jnp.float32)

    def convt_w(cin, cout):  # nn.ConvTranspose2d weight
        return 0.05 * jax.random.normal(next(keys), (cin, cout, 4, 4), jnp.float32)

    def bias(c):
        return 0.05 * jax.random.normal(next(keys), (c,), jnp.float32)

    p = {}
    p["d1_w"], p["d1_b"] = conv_w(bf, in_ch), bias(bf)            # normalize=False -> bias
    p["d2_w"] = conv_w(2 * bf, bf)
    p["d3_w"] = conv_w(4 * bf, 2 * bf)
    p["d4_w"] = conv_w(8 * bf, 4 * bf)
    p["d5_w"] = conv_w(8 * bf, 8 * bf)
    p["d6_w"] = conv_w(8 * bf, 8 * bf)
    p["d7_w"] = conv_w(8 * bf, 8 * bf)
    p["d8_w"], p["d8_b"] = conv_w(8 * bf, 8 * bf), bias(8 * bf)   # normalize=False -> bias
    p["u1_w"] = convt_w(8 * bf, 8 * bf)
    p["u2_w"] = convt_w(16 * bf, 8 * bf)
    p["u3_w"] = convt_w(16 * bf, 8 * bf)
    p["u4_w"] = convt_w(16 * bf, 8 * bf)
    p["u5_w"] = convt_w(16 * bf, 4 * bf)
    p["u6_w"] = convt_w(8 * bf, 2 * bf)
    p["u7_w"] = convt_w(4 * bf, bf)
    p["fin_w"], p["fin_b"] = convt_w(2 * bf, out_ch), bias(out_ch)
    return p


def prepare_params(p):
    """Hoist all weight re-layouts / bf16 casts / bias tiling out of the forward."""
    q = {}
    for name in ("d1", "d2", "d3", "d4", "d5", "d6", "d7", "d8"):
        q[name + "_w"] = _down_wprep(p[name + "_w"]).astype(jnp.bfloat16)
    q["d1_b"] = p["d1_b"].astype(jnp.float32)
    q["d8_b"] = p["d8_b"].astype(jnp.float32)
    q["u1_w"] = [_up_wprep(p["u1_w"]).astype(jnp.bfloat16)]
    for name in ("u2", "u3", "u4", "u5", "u6", "u7", "fin"):
        wt = p[name + "_w"]
        half = wt.shape[0] // 2                  # channels: [prev up output | skip]
        q[name + "_w"] = [_up_wprep(wt[:half]).astype(jnp.bfloat16),
                          _up_wprep(wt[half:]).astype(jnp.bfloat16)]
    q["fin_b"] = jnp.tile(p["fin_b"], 4).astype(jnp.float32)      # rows are (r, s, o)
    return q


# ---------------------------------------------------------------------------
# Full U-Net forward (NCHW in / NCHW out, matching PyTorch)
# ---------------------------------------------------------------------------
def unet_forward(prep, x_nchw):
    x = jnp.transpose(x_nchw, (1, 0, 2, 3)).astype(jnp.bfloat16)   # -> (C, N, H, W)
    d1 = down_block(x, prep["d1_w"], prep["d1_b"], normalize=False)
    d2 = down_block(d1, prep["d2_w"])
    d3 = down_block(d2, prep["d3_w"])
    d4 = down_block(d3, prep["d4_w"])
    d5 = down_block(d4, prep["d5_w"])
    d6 = down_block(d5, prep["d6_w"])
    d7 = down_block(d6, prep["d7_w"])
    d8 = down_block(d7, prep["d8_w"], prep["d8_b"], normalize=False)

    u = up_block([d8], prep["u1_w"])
    u = up_block([u, d7], prep["u2_w"])
    u = up_block([u, d6], prep["u3_w"])
    u = up_block([u, d5], prep["u4_w"])
    u = up_block([u, d4], prep["u5_w"])
    u = up_block([u, d3], prep["u6_w"])
    u = up_block([u, d2], prep["u7_w"])
    out = up_block([u, d1], prep["fin_w"], prep["fin_b"], final=True)  # Tanh, f32
    return jnp.transpose(out, (1, 0, 2, 3))                            # -> NCHW


# ---------------------------------------------------------------------------
# Definition-based references for self-checking the conv lowerings
# ---------------------------------------------------------------------------
def _ref_conv_down(x, w, b):
    C, N, H, W = x.shape
    xp = jnp.pad(x, ((0, 0), (0, 0), (1, 1), (1, 1)))
    Ho, Wo = H // 2, W // 2
    y = jnp.zeros((w.shape[0], N, Ho, Wo), jnp.float32)
    for ki in range(4):
        for kj in range(4):
            xs = xp[:, :, ki:ki + 2 * Ho:2, kj:kj + 2 * Wo:2]
            y = y + jnp.einsum("oi,inhw->onhw", w[:, :, ki, kj], xs,
                               precision=jax.lax.Precision.HIGHEST)
    if b is not None:
        y = y + b[:, None, None, None]
    return y


def _ref_convt(x, wt, b):
    Cin, N, H, W = x.shape
    Cout = wt.shape[1]
    y = jnp.zeros((Cout, N, 2 * H + 2, 2 * W + 2), jnp.float32)
    for u in range(4):
        for v in range(4):
            y = y.at[:, :, u:u + 2 * H:2, v:v + 2 * W:2].add(
                jnp.einsum("io,inhw->onhw", wt[:, :, u, v], x,
                           precision=jax.lax.Precision.HIGHEST))
    y = y[:, :, 1:1 + 2 * H, 1:1 + 2 * W]
    if b is not None:
        y = y + b[:, None, None, None]
    return y


if __name__ == "__main__":
    key = jax.random.PRNGKey(0)
    kp, kx, k1, k2, k3, k4, k5, k6 = jax.random.split(key, 8)

    # --- small self-checks of the conv lowerings (bf16 kernels vs f32 references) ---
    xc = jax.random.normal(k1, (5, 2, 8, 8), jnp.float32)            # (Cin, N, H, W)
    wc = 0.3 * jax.random.normal(k2, (7, 5, 4, 4), jnp.float32)
    bc = 0.3 * jax.random.normal(k3, (7,), jnp.float32)
    got = down_block(xc.astype(jnp.bfloat16), _down_wprep(wc), bc,
                     normalize=False).astype(jnp.float32)
    ref = _ref_conv_down(xc, wc, bc)
    ref = jnp.where(ref > 0, ref, 0.2 * ref)
    err = jnp.max(jnp.abs(got - ref)) / (jnp.max(jnp.abs(ref)) + 1e-6)
    assert float(err) < 0.08, f"down conv mismatch: {float(err)}"

    # down conv + fused InstanceNorm (f32 stats in the matmul epilogue)
    x1 = xc[:, :1]
    w8 = 0.3 * jax.random.normal(k4, (8, 5, 4, 4), jnp.float32)
    got = down_block(x1.astype(jnp.bfloat16), _down_wprep(w8)).astype(jnp.float32)
    r = _ref_conv_down(x1, w8, None)
    mu = jnp.mean(r, axis=(2, 3), keepdims=True)
    var = jnp.mean((r - mu) ** 2, axis=(2, 3), keepdims=True)
    r = (r - mu) * jax.lax.rsqrt(var + 1e-5)
    ref = jnp.where(r > 0, r, 0.2 * r)
    err = jnp.max(jnp.abs(got - ref)) / (jnp.max(jnp.abs(ref)) + 1e-6)
    assert float(err) < 0.1, f"down conv + IN mismatch: {float(err)}"

    # transposed conv, final path (bias + tanh)
    wt = 0.3 * jax.random.normal(k5, (5, 6, 4, 4), jnp.float32)
    bt = 0.3 * jax.random.normal(k6, (6,), jnp.float32)
    got = up_block([xc.astype(jnp.bfloat16)], [_up_wprep(wt)],
                   bias=jnp.tile(bt, 4), final=True)
    ref = jnp.tanh(_ref_convt(xc, wt, bt))
    err = jnp.max(jnp.abs(got - ref)) / (jnp.max(jnp.abs(ref)) + 1e-6)
    assert float(err) < 0.08, f"transposed conv mismatch: {float(err)}"

    # transposed conv + fused (parity-masked) InstanceNorm + ReLU
    wt8 = 0.3 * jax.random.normal(k4, (5, 8, 4, 4), jnp.float32)
    got = up_block([x1.astype(jnp.bfloat16)], [_up_wprep(wt8)]).astype(jnp.float32)
    r = _ref_convt(x1, wt8, None)
    mu = jnp.mean(r, axis=(2, 3), keepdims=True)
    var = jnp.mean((r - mu) ** 2, axis=(2, 3), keepdims=True)
    ref = jnp.maximum((r - mu) * jax.lax.rsqrt(var + 1e-5), 0.0)
    err = jnp.max(jnp.abs(got - ref)) / (jnp.max(jnp.abs(ref)) + 1e-6)
    assert float(err) < 0.1, f"transposed conv + IN mismatch: {float(err)}"

    # --- full U-Net forward (8 stride-2 stages need spatial 256; bf=4, N=1 keep it small) ---
    params = init_params(kp, in_ch=3, out_ch=3, bf=4)
    prep = prepare_params(params)                                     # weight prep hoisted
    x = jax.random.normal(kx, (1, 3, 256, 256), jnp.float32)          # NCHW like PyTorch

    y = jax.jit(unet_forward)(prep, x)
    y = jax.block_until_ready(y)

    assert y.shape == (1, 3, 256, 256), y.shape
    assert bool(jnp.all(jnp.isfinite(y)))
    assert bool(jnp.all(jnp.abs(y) <= 1.0 + 1e-6))                    # Tanh output range
    print("KERNEL_OK")
</pallas_src>

<mosaic_0001>
module attributes {stable_mosaic.version = 11 : i64} {
  func.func @kernel(%arg0: i32, %arg1: memref<24x256xbf16, #tpu.memory_space<vmem>>, %arg2: memref<4x7x24xbf16, #tpu.memory_space<vmem>>, %arg3: memref<7x1xf32, #tpu.memory_space<vmem>>, %arg4: memref<7x128xbf16, #tpu.memory_space<vmem>>) attributes {dimension_semantics = [#tpu.dimension_semantics<parallel>], iteration_bounds = array<i64: 1>, scalar_prefetch = 0 : i64, scratch_operands = 0 : i64, tpu.core_type = #tpu.core_type<tc>, window_params = [{pipeline_mode = #tpu.pipeline_mode<synchronous>, transform_indices = @transform_0, window_bounds = array<i64: 24, 256>}, {pipeline_mode = #tpu.pipeline_mode<synchronous>, transform_indices = @transform_1, window_bounds = array<i64: 4, 7, 24>}, {pipeline_mode = #tpu.pipeline_mode<synchronous>, transform_indices = @transform_2, window_bounds = array<i64: 7, 1>}, {transform_indices = @transform_3, window_bounds = array<i64: 7, 128>}]} {
    %c128_i32 = arith.constant 128 : i32
    %0 = arith.muli %arg0, %c128_i32 : i32
    %1 = tpu.assume_multiple %0, 128 : i32
    %cst = arith.constant 0.000000e+00 : f32
    %2 = vector.broadcast %cst : f32 to vector<7x128xf32>
    %c0 = arith.constant 0 : index
    %3 = arith.index_cast %1 : i32 to index
    %4 = vector.load %arg1[%c0, %3] : memref<24x256xbf16, #tpu.memory_space<vmem>>, vector<24x256xbf16>
    %c0_0 = arith.constant 0 : index
    %c0_1 = arith.constant 0 : index
    %c0_2 = arith.constant 0 : index
    %5 = vector.load %arg2[%c0_0, %c0_1, %c0_2] : memref<4x7x24xbf16, #tpu.memory_space<vmem>>, vector<1x7x24xbf16>
    %6 = vector.shape_cast %5 : vector<1x7x24xbf16> to vector<7x24xbf16>
    %7 = vector.extract_strided_slice %4 {offsets = [0, 0], sizes = [24, 128], strides = [1, 1]} : vector<24x256xbf16> to vector<24x128xbf16>
    %cst_3 = arith.constant dense<0.000000e+00> : vector<7x128xf32>
    %8 = tpu.matmul %6, %7, %cst_3 {dimension_numbers = #tpu.dot_dimension_numbers<[1], [0], [0], [1], [0, 0, 1, 1], [], []>} : vector<7x24xbf16>, vector<24x128xbf16>, vector<7x128xf32> -> vector<7x128xf32>
    %9 = arith.addf %2, %8 : vector<7x128xf32>
    %c1 = arith.constant 1 : index
    %c0_4 = arith.constant 0 : index
    %c0_5 = arith.constant 0 : index
    %10 = vector.load %arg2[%c1, %c0_4, %c0_5] : memref<4x7x24xbf16, #tpu.memory_space<vmem>>, vector<1x7x24xbf16>
    %11 = vector.shape_cast %10 : vector<1x7x24xbf16> to vector<7x24xbf16>
    %12 = vector.extract_strided_slice %4 {offsets = [0, 1], sizes = [24, 128], strides = [1, 1]} : vector<24x256xbf16> to vector<24x128xbf16>
    %cst_6 = arith.constant dense<0.000000e+00> : vector<7x128xf32>
    %13 = tpu.matmul %11, %12, %cst_6 {dimension_numbers = #tpu.dot_dimension_numbers<[1], [0], [0], [1], [0, 0, 1, 1], [], []>} : vector<7x24xbf16>, vector<24x128xbf16>, vector<7x128xf32> -> vector<7x128xf32>
    %14 = arith.addf %9, %13 : vector<7x128xf32>
    %c2 = arith.constant 2 : index
    %c0_7 = arith.constant 0 : index
    %c0_8 = arith.constant 0 : index
    %15 = vector.load %arg2[%c2, %c0_7, %c0_8] : memref<4x7x24xbf16, #tpu.memory_space<vmem>>, vector<1x7x24xbf16>
    %16 = vector.shape_cast %15 : vector<1x7x24xbf16> to vector<7x24xbf16>
    %17 = vector.extract_strided_slice %4 {offsets = [0, 5], sizes = [24, 128], strides = [1, 1]} : vector<24x256xbf16> to vector<24x128xbf16>
    %cst_9 = arith.constant dense<0.000000e+00> : vector<7x128xf32>
    %18 = tpu.matmul %16, %17, %cst_9 {dimension_numbers = #tpu.dot_dimension_numbers<[1], [0], [0], [1], [0, 0, 1, 1], [], []>} : vector<7x24xbf16>, vector<24x128xbf16>, vector<7x128xf32> -> vector<7x128xf32>
    %19 = arith.addf %14, %18 : vector<7x128xf32>
    %c3 = arith.constant 3 : index
    %c0_10 = arith.constant 0 : index
    %c0_11 = arith.constant 0 : index
    %20 = vector.load %arg2[%c3, %c0_10, %c0_11] : memref<4x7x24xbf16, #tpu.memory_space<vmem>>, vector<1x7x24xbf16>
    %21 = vector.shape_cast %20 : vector<1x7x24xbf16> to vector<7x24xbf16>
    %22 = vector.extract_strided_slice %4 {offsets = [0, 6], sizes = [24, 128], strides = [1, 1]} : vector<24x256xbf16> to vector<24x128xbf16>
    %cst_12 = arith.constant dense<0.000000e+00> : vector<7x128xf32>
    %23 = tpu.matmul %21, %22, %cst_12 {dimension_numbers = #tpu.dot_dimension_numbers<[1], [0], [0], [1], [0, 0, 1, 1], [], []>} : vector<7x24xbf16>, vector<24x128xbf16>, vector<7x128xf32> -> vector<7x128xf32>
    %24 = arith.addf %19, %23 : vector<7x128xf32>
    %c0_13 = arith.constant 0 : index
    %c0_14 = arith.constant 0 : index
    %25 = vector.load %arg3[%c0_13, %c0_14] : memref<7x1xf32, #tpu.memory_space<vmem>>, vector<7x1xf32>
    %26 = vector.broadcast %25 : vector<7x1xf32> to vector<7x128xf32>
    %27 = arith.addf %24, %26 : vector<7x128xf32>
    %cst_15 = arith.constant 0.000000e+00 : f32
    %28 = vector.broadcast %cst_15 : f32 to vector<7x128xf32>
    %29 = arith.cmpf ogt, %27, %28 : vector<7x128xf32>
    %cst_16 = arith.constant 2.000000e-01 : f32
    %30 = vector.broadcast %cst_16 : f32 to vector<7x128xf32>
    %31 = arith.mulf %30, %27 : vector<7x128xf32>
    %32 = arith.select %29, %27, %31 : vector<7x128xi1>, vector<7x128xf32>
    %33 = arith.truncf %32 : vector<7x128xf32> to vector<7x128xbf16>
    %c0_17 = arith.constant 0 : index
    %c0_18 = arith.constant 0 : index
    %34 = vector.load %arg4[%c0_17, %c0_18] : memref<7x128xbf16, #tpu.memory_space<vmem>>, vector<7x128xbf16>
    tpu.vector_store %arg4[%c0_17, %c0_18], %33 {strides = array<i32>} : memref<7x128xbf16, #tpu.memory_space<vmem>>, vector<7x128xbf16>,
    return
  }
  func.func @transform_0(%arg0: i32) -> (i32, i32) {
    %c0_i32 = arith.constant 0 : i32
    %c0_i32_0 = arith.constant 0 : i32
    %c0_i32_1 = arith.constant 0 : i32
    return %c0_i32, %c0_i32_0 : i32, i32
  }
  func.func @transform_1(%arg0: i32) -> (i32, i32, i32) {
    %c0_i32 = arith.constant 0 : i32
    %c0_i32_0 = arith.constant 0 : i32
    %c0_i32_1 = arith.constant 0 : i32
    %c0_i32_2 = arith.constant 0 : i32
    return %c0_i32, %c0_i32_0, %c0_i32_1 : i32, i32, i32
  }
  func.func @transform_2(%arg0: i32) -> (i32, i32) {
    %c0_i32 = arith.constant 0 : i32
    %c0_i32_0 = arith.constant 0 : i32
    %c0_i32_1 = arith.constant 0 : i32
    return %c0_i32, %c0_i32_0 : i32, i32
  }
  func.func @transform_3(%arg0: i32) -> (i32, i32) {
    %c0_i32 = arith.constant 0 : i32
    %c0_i32_0 = arith.constant 0 : i32
    return %c0_i32, %arg0 : i32, i32
  }
}

</mosaic_0001>

<bundles_post_ra>
// kernel: tpu_custom_call.1
= control target key start
LH: loop header
LB: loop body
LE: loop exit
PB: predicated region body
PF: predicated region fallthrough
CT: control target
= control target key end

     0   :  { %s316_s0 = inlined_call_operand.vmem [shape: bf16[24,256], index: 0, kind: input, shape index: {}]   ;;  %s317_s1 = inlined_call_operand.vmem [shape: bf16[4,7,24], index: 1, kind: input, shape index: {}]   ;;  %s318_s2 = inlined_call_operand.vmem [shape: f32[7,1], index: 2, kind: input, shape index: {}]   ;;  %s319_s3 = inlined_call_operand.hbm [shape: bf16[7,128], index: 3, kind: output, shape index: {}]  }
   0x1   :  { %v23_v0 = vld [vmem:[%s316_s0 + $0x10] sm:$0xff] }
   0x2   :  { %v34_v1 = vunpack.c.l.b16 %v23_v0 }
   0x3   :  { %8 = vsyncpa [#allocation3], 0  ;;  %s245_s14 = smov 122   ;;  %s246_s15 = smov 123   ;;  %v35_v3 = vunpack.c.h.b16 %v23_v0  ;;  %v199_v5 = vld [vmem:[%s316_s0] sm:$0xf] }
   0x4   :  { %v38_v2 = vpack.c.b16 %v34_v1, %v34_v1  ;;  %s247_s16 = smov 127   ;;  %v212_v6 = vld [vmem:[%s316_s0 + $0x4] sm:$0xf0]  ;;  %v211_v7 = vld [vmem:[%s316_s0 + $0x4] sm:$0xf]  ;;  %vm56_vm0 = vcmask 1043456  }
   0x5   :  { %v39_v4 = vpack.c.b16 %v35_v3, %v35_v3  ;;  %v201_v8 = vld [vmem:[%s316_s0 + $0x8] sm:$0xf0]  ;;  %v200_v9 = vor.u32 %v212_v6, %v199_v5  ;;  %vm48_vm1 = vcmask 1039360   ;;  %vm52_vm2 = vcmask 195584   ;;  %v24_v16 = vld [vmem:[%s317_s1] sm:$0xf] }
   0x6   :  { %133 = vrot.lane.b32.xlu1 %v38_v2, %s245_s14  ;;  %99 = vrot.lane.b32.xlu0 %v38_v2, %s246_s15  ;;  %v204_v10 = vor.u32 %v211_v7, %v201_v8  ;;  %v78_v12 = vsel %vm56_vm0, %v38_v2, 0  ;;  %v161_v17 = vld [vmem:[%s318_s2] sm:$0x7f]  ;;  %v248_v18 = vmov 0   ;;  %vm103_vm3 = vcmask 1006592   ;;  %s185_s9 = sshll.u32 %s319_s3, 4  ;;  %s186_s9 = int_to_ptr.hbm [resolvable:$true] %s185_s9 }
   0x7   :  { %44 = vrot.lane.b32.xlu2 %v38_v2, %s247_s16  ;;  %86 = vmatpush.bf16.msra.mxu1 %v78_v12  ;;  %vm137_vm4 = vcmask 998400   ;;  %v207_v31 = vld [vmem:[%s317_s1 + $0x8] sm:$0xf]  ;;  %v196_v37 = vld [vmem:[%s317_s1 + $0x4] sm:$0xf] }
   0x8   :  { %218 = vset.pattern.permute.xlu0 %v248_v18  ;;  %v209_v38 = vld [vmem:[%s317_s1 + $0xc] sm:$0xf]  ;;  %vm173_vm5 = vsmask.f32 3328  ;;  %s249_s1 = smov [#allocation2]  }
   0x9   :  { %s183_s6 = sshll.u32 %s249_s1, 4  ;;  %vm174_vm7 = vmand %vm56_vm0, %vm173_vm5  ;;  %v175_v53 = vld [vmem:[#allocation2] sm:$0xf]  ;;  %s184_s6 = int_to_ptr.vmem [resolvable:$true] %s183_s6 }
   0xb   :  { %87 = vmatpush.bf16.msra.mxu1 %v200_v9 }
   0xe   :  { %135 = vrot.lane.b32.xlu1 %v39_v4, %s245_s14  ;;  %101 = vrot.lane.b32.xlu0 %v39_v4, %s246_s15 }
   0xf   :  { %46 = vrot.lane.b32.xlu2 %v39_v4, %s247_s16  ;;  %206 = vmatmul.msk.bf16.vlgmr.msra.gmra.mxu1 %vm52_vm2, %v24_v16 }
  0x16   :  { %95 = vrot.lane.b32.xlu0 %v200_v9, %s246_s15  ;;  %97 = vrot.lane.b32.xlu1 %v204_v10, %s246_s15 }
  0x17   :  { %129 = vrot.lane.b32.xlu2 %v200_v9, %s245_s14 }
  0x1e   :  { %131 = vrot.lane.b32.xlu0 %v204_v10, %s245_s14  ;;  %40 = vrot.lane.b32.xlu1 %v200_v9, %s247_s16 }
  0x1f   :  { %42 = vrot.lane.b32.xlu2 %v204_v10, %s247_s16 }
  0x26   :  { %164 = vperm.xlu0 %218, %v161_v17  }
  0x61   :  { %v45_v11 = vpop.permute.xlu2 %44 }
  0x69   :  { %v47_v13 = vpop.permute.xlu2 %46 }
  0x6a   :  { %v50_v14 = vsel %vm48_vm1, %v45_v11, %v47_v13 }
  0x6b   :  { %v58_v15 = vsel %vm56_vm0, %v50_v14, 0 }
  0x6c   :  { %66 = vmatpush.bf16.msra.mxu0 %v58_v15 }
  0x71   :  { %v130_v27 = vpop.permute.xlu2 %129 }
  0x78   :  { %v134_v19 = vpop.permute.xlu1 %133  ;;  %v100_v20 = vpop.permute.xlu0 %99 }
  0x79   :  { %v43_v32 = vpop.permute.xlu2 %42 }
  0x80   :  { %v136_v21 = vpop.permute.xlu1 %135  ;;  %v102_v22 = vpop.permute.xlu0 %101 }
  0x81   :  { %v105_v23 = vsel %vm103_vm3, %v100_v20, %v102_v22  ;;  %v139_v24 = vsel %vm137_vm4, %v134_v19, %v136_v21 }
  0x82   :  { %v111_v25 = vsel %vm56_vm0, %v105_v23, 0  ;;  %v145_v26 = vsel %vm56_vm0, %v139_v24, 0 }
  0x83   :  { %119 = vmatpush.bf16.msra.mxu2 %v111_v25  ;;  %153 = vmatpush.bf16.msra.mxu3 %v145_v26 }
  0x88   :  { %v96_v28 = vpop.permute.xlu0 %95  ;;  %v98_v29 = vpop.permute.xlu1 %97 }
  0x89   :  { %v104_v30 = vsel %vm103_vm3, %v96_v28, %v98_v29 }
  0x8a   :  { %120 = vmatpush.bf16.msra.mxu2 %v104_v30 }
  0x8c   :  { %v89_v39 = vpop.f32.mrf.mxu1 }
  0x8d   :  { %208 = vmatmul.msk.bf16.vlgmr.msra.gmra.mxu2 %vm52_vm2, %v207_v31 }
  0x90   :  { %v132_v33 = vpop.permute.xlu0 %131  ;;  %v41_v34 = vpop.permute.xlu1 %40 }
  0x91   :  { %v49_v35 = vsel %vm48_vm1, %v41_v34, %v43_v32  ;;  %v138_v36 = vsel %vm137_vm4, %v130_v27, %v132_v33 }
  0x92   :  { %67 = vmatpush.bf16.msra.mxu0 %v49_v35  ;;  %154 = vmatpush.bf16.msra.mxu3 %v138_v36 }
  0x94   :  { %v91_v40 = vpop.f32.mrf.mxu1 }
  0x95   :  { %205 = vmatmul.msk.bf16.vlgmr.msra.gmra.mxu0 %vm52_vm2, %v196_v37  ;;  %210 = vmatmul.msk.bf16.vlgmr.msra.gmra.mxu3 %vm52_vm2, %v209_v38 }
  0x98   :  { %v165_v45 = vpop.permute.xlu0 %164 }
 0x110   :  { %v122_v41 = vpop.f32.mrf.mxu2 }
 0x112   :  { %v69_v42 = vpop.f32.mrf.mxu0 }
 0x113   :  { %v90_v43 = vadd.f32 %v89_v39, %v69_v42 }
 0x115   :  { %v126_v44 = vadd.f32 %v122_v41, %v90_v43 }
 0x118   :  { %v124_v46 = vpop.f32.mrf.mxu2  ;;  %v156_v47 = vpop.f32.mrf.mxu3 }
 0x119   :  { %v160_v48 = vadd.f32 %v156_v47, %v126_v44 }
 0x11a   :  { %v71_v49 = vpop.f32.mrf.mxu0 }
 0x11b   :  { %v167_v50 = vadd.f32 %v165_v45, %v160_v48 }
 0x11d   :  { %vm168_vm6 = vcmp.gt.f32.partialorder %v167_v50, 0.0  ;;  %v169_v51 = vmul.f32 0.2, %v167_v50 }
 0x11f   :  { %v170_v52 = vsel %vm168_vm6, %v167_v50, %v169_v51 }
 0x120   :  { %v171_v54 = vpack.c.bf16 %v170_v52, %v170_v52  ;;  %v158_v55 = vpop.f32.mrf.mxu3 }
 0x122   :  { %v176_v56 = vsel %vm174_vm7, %v171_v54, %v175_v53 }
 0x123   :  { %177 = vst [vmem:[#allocation2] sm:$0xf] %v176_v56 }
 0x124   :  { %188 = dma.vmem_to_hbm [thread:$0]  %s184_s6, 64, %s186_s9, [#allocation3]  }
 0x125   :  { %243 = dma.done.wait [#allocation3], 64  }
 0x126   :  { %244 = vsyncadd [#allocation3], 4294967232 }
 0x127   :  { %193 = vsyncpa [#allocation3], 1 }

</bundles_post_ra>
